<compile_context>
chip_gen: v7x
topology: tpu7x:2x2x1
jax: 0.10.0
libtpu: 0.0.40
codegen_flags: <defaults>
</compile_context>

<pallas_src>
import jax
import jax.numpy as jnp
from jax.experimental import pallas as pl
from jax.experimental.pallas import tpu as pltpu

HASH_SIZE = 8
# torchvision.transforms.Grayscale() / rgb_to_grayscale weights (ITU-R 601-2).
_GRAY_W = (0.2989, 0.587, 0.114)


def _bilinear_matrix(in_size: int, out_size: int) -> jnp.ndarray:
    """Row-interpolation matrix W (out_size, in_size) s.t. W @ img == bilinear
    resize along that axis (PyTorch/torchvision bilinear, align_corners=False,
    antialias=False)."""
    # TODO(synk): recent torchvision defaults to antialias=True for tensor
    # inputs; classic (non-antialiased) bilinear is implemented here.
    scale = in_size / out_size
    i = jnp.arange(out_size, dtype=jnp.float32)
    src = (i + 0.5) * scale - 0.5
    src = jnp.clip(src, 0.0, float(in_size - 1))
    lo = jnp.floor(src)
    frac = src - lo
    lo_i = lo.astype(jnp.int32)
    hi_i = jnp.minimum(lo_i + 1, in_size - 1)
    rows = jnp.arange(out_size)
    W = jnp.zeros((out_size, in_size), jnp.float32)
    W = W.at[rows, lo_i].add(1.0 - frac)
    W = W.at[rows, hi_i].add(frac)
    return W


def _pick_h_block(h: int, max_blk: int = 512) -> int:
    """Largest H tile satisfying the Pallas (8,128) layout constraint:
    either a multiple of 128 that divides H, or the full H."""
    if h <= max_blk:
        return h
    for cand in range(max_blk, 127, -128):
        if h % cand == 0:
            return cand
    # TODO(synk): pad H to a multiple of 128 so odd heights (e.g. 1080) can be
    # tiled instead of falling back to one large block.
    return h


def _ahash_kernel(x_ref, whc_ref, wwt_ref, out_ref, acc_ref):
    # x_ref  : [1, 3, H_BLK, W]   input tile (native dtype), batch 0 only
    # whc_ref: [3, 8, H_BLK] f32  row-resize matrices with grayscale weight folded in
    # wwt_ref: [W, 8]        f32  column-resize matrix, pre-transposed
    # out_ref: [1, 8, 8]     i32  hash bits (written on last grid step)
    # acc_ref: [8, W]        f32  partial row-resized grayscale accumulator
    i = pl.program_id(0)

    @pl.when(i == 0)
    def _():
        acc_ref[...] = jnp.zeros_like(acc_ref)

    # acc[8, W] += sum_c (gray_w[c] * WH_blk) @ x[0, c, blk]   (MXU, f32 acc)
    part = jnp.dot(whc_ref[0], x_ref[0, 0].astype(jnp.float32),
                   preferred_element_type=jnp.float32)
    part += jnp.dot(whc_ref[1], x_ref[0, 1].astype(jnp.float32),
                    preferred_element_type=jnp.float32)
    part += jnp.dot(whc_ref[2], x_ref[0, 2].astype(jnp.float32),
                    preferred_element_type=jnp.float32)
    acc_ref[...] += part

    @pl.when(i == pl.num_programs(0) - 1)
    def _():
        resized = jnp.dot(acc_ref[...], wwt_ref[...],
                          preferred_element_type=jnp.float32)   # [8, 8]
        avg = jnp.mean(resized)
        out_ref[0, :, :] = (resized > avg).astype(jnp.int32)


def ahash(x: jnp.ndarray, hash_size: int = HASH_SIZE) -> jnp.ndarray:
    """Average-hash forward. x: [N, 3, H, W] (any float/int dtype).
    Returns bool [1, hash_size, hash_size] (hash of image 0, like the module)."""
    N, C, H, W = x.shape
    assert C == 3, "Grayscale transform expects RGB input"

    h_blk = _pick_h_block(H)
    assert H % h_blk == 0
    num_blk = H // h_blk

    # Row-resize matrix with the grayscale weights folded in: [3, 8, H].
    wh = _bilinear_matrix(H, hash_size)
    gray_w = jnp.asarray(_GRAY_W, jnp.float32)
    whc = gray_w[:, None, None] * wh[None, :, :]
    # Column-resize matrix, pre-transposed so the kernel never transposes: [W, 8].
    wwt = _bilinear_matrix(W, hash_size).T

    x_spec_kwargs = {}
    if num_blk >= 3:
        # Deeper buffering: per-block compute (skinny M=8 matmul) is tiny, so a
        # third buffer helps hide the block DMA.
        x_spec_kwargs["pipeline_mode"] = pl.Buffered(3)

    out_i32 = pl.pallas_call(
        _ahash_kernel,
        out_shape=jax.ShapeDtypeStruct((1, hash_size, hash_size), jnp.int32),
        grid=(num_blk,),
        in_specs=[
            # Only batch element 0 is ever fetched; H is tiled for pipelining.
            pl.BlockSpec((1, C, h_blk, W), lambda i: (0, 0, i, 0),
                         **x_spec_kwargs),
            pl.BlockSpec((3, hash_size, h_blk), lambda i: (0, 0, i)),
            pl.BlockSpec((W, hash_size), lambda i: (0, 0)),
        ],
        out_specs=pl.BlockSpec((1, hash_size, hash_size), lambda i: (0, 0, 0)),
        scratch_shapes=[pltpu.VMEM((hash_size, W), jnp.float32)],
        compiler_params=pltpu.CompilerParams(
            dimension_semantics=("arbitrary",)),
    )(x, whc, wwt)

    return out_i32.astype(jnp.bool_)


if __name__ == "__main__":
    key = jax.random.PRNGKey(0)
    # Small RGB batch consistent with the module's expected input: [N, 3, H, W]
    x = jax.random.uniform(key, (2, 3, 16, 16), dtype=jnp.float32)

    bits = ahash(x)
    jax.block_until_ready(bits)

    assert bits.shape == (1, HASH_SIZE, HASH_SIZE)
    assert bits.dtype == jnp.bool_
    print("KERNEL_OK")
</pallas_src>

<mosaic_0001>
module attributes {stable_mosaic.version = 11 : i64} {
  func.func @_ahash_kernel(%arg0: i32, %arg1: memref<1x3x16x16xf32, #tpu.memory_space<vmem>>, %arg2: memref<3x8x16xf32, #tpu.memory_space<vmem>>, %arg3: memref<16x8xf32, #tpu.memory_space<vmem>>, %arg4: memref<1x8x8xi32, #tpu.memory_space<vmem>>, %arg5: memref<8x16xf32, #tpu.memory_space<vmem>>) attributes {dimension_semantics = [#tpu.dimension_semantics<arbitrary>], iteration_bounds = array<i64: 1>, scalar_prefetch = 0 : i64, scratch_operands = 1 : i64, tpu.core_type = #tpu.core_type<tc>, window_params = [{transform_indices = @transform_0, window_bounds = array<i64: 1, 3, 16, 16>}, {transform_indices = @transform_1, window_bounds = array<i64: 3, 8, 16>}, {pipeline_mode = #tpu.pipeline_mode<synchronous>, transform_indices = @transform_2, window_bounds = array<i64: 16, 8>}, {pipeline_mode = #tpu.pipeline_mode<synchronous>, transform_indices = @transform_3, window_bounds = array<i64: 1, 8, 8>}]} {
    %c0_i32 = arith.constant 0 : i32
    %0 = arith.cmpi eq, %arg0, %c0_i32 : i32
    %1 = arith.extui %0 : i1 to i32
    %c0_i32_0 = arith.constant 0 : i32
    %2 = arith.cmpi ne, %1, %c0_i32_0 : i32
    scf.if %2 {
      %cst_27 = arith.constant 0.000000e+00 : f32
      %26 = vector.broadcast %cst_27 : f32 to vector<8x16xf32>
      %c0_28 = arith.constant 0 : index
      %c0_29 = arith.constant 0 : index
      %27 = vector.load %arg5[%c0_28, %c0_29] : memref<8x16xf32, #tpu.memory_space<vmem>>, vector<8x16xf32>
      tpu.vector_store %arg5[%c0_28, %c0_29], %26 {strides = array<i32>} : memref<8x16xf32, #tpu.memory_space<vmem>>, vector<8x16xf32>,
    } else {
    }
    %c0 = arith.constant 0 : index
    %c0_1 = arith.constant 0 : index
    %c0_2 = arith.constant 0 : index
    %3 = vector.load %arg2[%c0, %c0_1, %c0_2] : memref<3x8x16xf32, #tpu.memory_space<vmem>>, vector<1x8x16xf32>
    %4 = vector.shape_cast %3 : vector<1x8x16xf32> to vector<8x16xf32>
    %c0_3 = arith.constant 0 : index
    %c0_4 = arith.constant 0 : index
    %c0_5 = arith.constant 0 : index
    %c0_6 = arith.constant 0 : index
    %5 = vector.load %arg1[%c0_3, %c0_4, %c0_5, %c0_6] : memref<1x3x16x16xf32, #tpu.memory_space<vmem>>, vector<1x1x16x16xf32>
    %6 = vector.shape_cast %5 : vector<1x1x16x16xf32> to vector<16x16xf32>
    %cst = arith.constant dense<0.000000e+00> : vector<8x16xf32>
    %7 = tpu.matmul %4, %6, %cst {dimension_numbers = #tpu.dot_dimension_numbers<[1], [0], [0], [1], [0, 0, 1, 1], [], []>} : vector<8x16xf32>, vector<16x16xf32>, vector<8x16xf32> -> vector<8x16xf32>
    %c1 = arith.constant 1 : index
    %c0_7 = arith.constant 0 : index
    %c0_8 = arith.constant 0 : index
    %8 = vector.load %arg2[%c1, %c0_7, %c0_8] : memref<3x8x16xf32, #tpu.memory_space<vmem>>, vector<1x8x16xf32>
    %9 = vector.shape_cast %8 : vector<1x8x16xf32> to vector<8x16xf32>
    %c0_9 = arith.constant 0 : index
    %c1_10 = arith.constant 1 : index
    %c0_11 = arith.constant 0 : index
    %c0_12 = arith.constant 0 : index
    %10 = vector.load %arg1[%c0_9, %c1_10, %c0_11, %c0_12] : memref<1x3x16x16xf32, #tpu.memory_space<vmem>>, vector<1x1x16x16xf32>
    %11 = vector.shape_cast %10 : vector<1x1x16x16xf32> to vector<16x16xf32>
    %cst_13 = arith.constant dense<0.000000e+00> : vector<8x16xf32>
    %12 = tpu.matmul %9, %11, %cst_13 {dimension_numbers = #tpu.dot_dimension_numbers<[1], [0], [0], [1], [0, 0, 1, 1], [], []>} : vector<8x16xf32>, vector<16x16xf32>, vector<8x16xf32> -> vector<8x16xf32>
    %13 = arith.addf %7, %12 : vector<8x16xf32>
    %c2 = arith.constant 2 : index
    %c0_14 = arith.constant 0 : index
    %c0_15 = arith.constant 0 : index
    %14 = vector.load %arg2[%c2, %c0_14, %c0_15] : memref<3x8x16xf32, #tpu.memory_space<vmem>>, vector<1x8x16xf32>
    %15 = vector.shape_cast %14 : vector<1x8x16xf32> to vector<8x16xf32>
    %c0_16 = arith.constant 0 : index
    %c2_17 = arith.constant 2 : index
    %c0_18 = arith.constant 0 : index
    %c0_19 = arith.constant 0 : index
    %16 = vector.load %arg1[%c0_16, %c2_17, %c0_18, %c0_19] : memref<1x3x16x16xf32, #tpu.memory_space<vmem>>, vector<1x1x16x16xf32>
    %17 = vector.shape_cast %16 : vector<1x1x16x16xf32> to vector<16x16xf32>
    %cst_20 = arith.constant dense<0.000000e+00> : vector<8x16xf32>
    %18 = tpu.matmul %15, %17, %cst_20 {dimension_numbers = #tpu.dot_dimension_numbers<[1], [0], [0], [1], [0, 0, 1, 1], [], []>} : vector<8x16xf32>, vector<16x16xf32>, vector<8x16xf32> -> vector<8x16xf32>
    %19 = arith.addf %13, %18 : vector<8x16xf32>
    %c0_21 = arith.constant 0 : index
    %c0_22 = arith.constant 0 : index
    %20 = vector.load %arg5[%c0_21, %c0_22] : memref<8x16xf32, #tpu.memory_space<vmem>>, vector<8x16xf32>
    %21 = arith.addf %20, %19 : vector<8x16xf32>
    %c0_23 = arith.constant 0 : index
    %c0_24 = arith.constant 0 : index
    %22 = vector.load %arg5[%c0_23, %c0_24] : memref<8x16xf32, #tpu.memory_space<vmem>>, vector<8x16xf32>
    tpu.vector_store %arg5[%c0_23, %c0_24], %21 {strides = array<i32>} : memref<8x16xf32, #tpu.memory_space<vmem>>, vector<8x16xf32>,
    %c0_i32_25 = arith.constant 0 : i32
    %23 = arith.cmpi eq, %arg0, %c0_i32_25 : i32
    %24 = arith.extui %23 : i1 to i32
    %c0_i32_26 = arith.constant 0 : i32
    %25 = arith.cmpi ne, %24, %c0_i32_26 : i32
    scf.if %25 {
      %c0_27 = arith.constant 0 : index
      %c0_28 = arith.constant 0 : index
      %26 = vector.load %arg5[%c0_27, %c0_28] : memref<8x16xf32, #tpu.memory_space<vmem>>, vector<8x16xf32>
      %c0_29 = arith.constant 0 : index
      %c0_30 = arith.constant 0 : index
      %27 = vector.load %arg3[%c0_29, %c0_30] : memref<16x8xf32, #tpu.memory_space<vmem>>, vector<16x8xf32>
      %cst_31 = arith.constant dense<0.000000e+00> : vector<8x8xf32>
      %28 = tpu.matmul %26, %27, %cst_31 {dimension_numbers = #tpu.dot_dimension_numbers<[1], [0], [0], [1], [0, 0, 1, 1], [], []>} : vector<8x16xf32>, vector<16x8xf32>, vector<8x8xf32> -> vector<8x8xf32>
      %29 = vector.shape_cast %28 : vector<8x8xf32> to vector<1x8x8xf32>
      %cst_32 = arith.constant dense<0.000000e+00> : vector<1xf32>
      %30 = vector.multi_reduction <add>, %29, %cst_32 [1, 2] : vector<1x8x8xf32> to vector<1xf32>
      %31 = vector.shape_cast %30 : vector<1xf32> to vector<1x1x1xf32>
      %32 = vector.extract %31[0, 0, 0] : f32 from vector<1x1x1xf32>
      %cst_33 = arith.constant 6.400000e+01 : f32
      %33 = arith.divf %32, %cst_33 : f32
      %34 = vector.broadcast %33 : f32 to vector<8x8xf32>
      %35 = arith.cmpf ogt, %28, %34 : vector<8x8xf32>
      %36 = arith.extui %35 : vector<8x8xi1> to vector<8x8xi32>
      %c0_34 = arith.constant 0 : index
      %c0_35 = arith.constant 0 : index
      %c0_36 = arith.constant 0 : index
      %37 = vector.load %arg4[%c0_34, %c0_35, %c0_36] : memref<1x8x8xi32, #tpu.memory_space<vmem>>, vector<1x8x8xi32>
      %38 = vector.shape_cast %37 : vector<1x8x8xi32> to vector<8x8xi32>
      %39 = vector.shape_cast %36 : vector<8x8xi32> to vector<1x8x8xi32>
      tpu.vector_store %arg4[%c0_34, %c0_35, %c0_36], %39 {strides = array<i32>} : memref<1x8x8xi32, #tpu.memory_space<vmem>>, vector<1x8x8xi32>,
    } else {
    }
    return
  }
  func.func @transform_0(%arg0: i32) -> (i32, i32, i32, i32) {
    %c0_i32 = arith.constant 0 : i32
    %c0_i32_0 = arith.constant 0 : i32
    %c0_i32_1 = arith.constant 0 : i32
    %c0_i32_2 = arith.constant 0 : i32
    return %c0_i32, %c0_i32_0, %arg0, %c0_i32_1 : i32, i32, i32, i32
  }
  func.func @transform_1(%arg0: i32) -> (i32, i32, i32) {
    %c0_i32 = arith.constant 0 : i32
    %c0_i32_0 = arith.constant 0 : i32
    %c0_i32_1 = arith.constant 0 : i32
    return %c0_i32, %c0_i32_0, %arg0 : i32, i32, i32
  }
  func.func @transform_2(%arg0: i32) -> (i32, i32) {
    %c0_i32 = arith.constant 0 : i32
    %c0_i32_0 = arith.constant 0 : i32
    %c0_i32_1 = arith.constant 0 : i32
    return %c0_i32, %c0_i32_0 : i32, i32
  }
  func.func @transform_3(%arg0: i32) -> (i32, i32, i32) {
    %c0_i32 = arith.constant 0 : i32
    %c0_i32_0 = arith.constant 0 : i32
    %c0_i32_1 = arith.constant 0 : i32
    %c0_i32_2 = arith.constant 0 : i32
    return %c0_i32, %c0_i32_0, %c0_i32_1 : i32, i32, i32
  }
}

</mosaic_0001>

<bundles_post_ra>
// kernel: tpu_custom_call.1
= control target key start
LH: loop header
LB: loop body
LE: loop exit
PB: predicated region body
PF: predicated region fallthrough
CT: control target
= control target key end

     0   :  { %8 = vsyncpa [#allocation4], 0  ;;  %s582_s0 = inlined_call_operand.hbm [shape: f32[2,3,16,16], index: 0, kind: input, shape index: {}]   ;;  %s583_s1 = inlined_call_operand.vmem [shape: f32[3,8,16], index: 1, kind: input, shape index: {}]   ;;  %s584_s2 = inlined_call_operand.vmem [shape: f32[16,8], index: 2, kind: input, shape index: {}]   ;;  %s585_s3 = inlined_call_operand.hbm [shape: s32[1,8,8], index: 3, kind: output, shape index: {}]  }
   0x1   :  { %9 = vsyncpa [#allocation5], 0  ;;  %s500_s12 = smov [#allocation3]   ;;  %s452_s16 = scalar_lea.hbm %s582_s0, 768 }
   0x2   :  { %s15_s13 = sshll.u32 %s500_s12, 4  ;;  %p453_p0 = scmp.ne.s32.totalorder %s582_s0, %s452_s16  ;;  %s16_s13 = int_to_ptr.vmem [resolvable:$true] %s15_s13 }
   0x3   :  { %s454_s21 = scalar_lea.hbm %s582_s0, 1536  ;;  %p456_p2 = scmp.lt.u32.totalorder %s452_s16, %s582_s0 }
   0x4   :  { %p455_p1 = scmp.lt.u32.totalorder %s454_s21, %s452_s16 }
   0x6   :  { %p457_p3 = por %p456_p2, %p455_p1 }
   0x8   :  { %p458_p4 = pnand %p457_p3, %p453_p0 }
   0xa   :  { %461 = shalt.err (!%p458_p4)
}
   0xb   :  { %s462_s24 = scalar_lea.vmem %s16_s13, 768  ;;  %p467_p6 = scmp.lt.s32.totalorder %s16_s13, %s16_s13 }
   0xc   :  { %p463_p5 = scmp.ne.s32.totalorder %s16_s13, %s462_s24  ;;  %p468_p7 = scmp.lt.s32.totalorder %s462_s24, %s462_s24 }
   0xe   :  { %p469_p8 = por %p468_p7, %p467_p6 }
  0x10   :  { %p470_p9 = pnand %p469_p8, %p463_p5 }
  0x12   :  { %473 = shalt.err (!%p470_p9)
}
  0x13   :  { %s501_s25 = smov 128   ;;  %s502_s26 = smov 8  }
  0x14   :  { %21 = dma.hbm_to_vmem [thread:$0]  %s582_s0, 768, %s16_s13, [#allocation4], %s501_s25, %s501_s25, %s502_s26  }
  0x15   :  { %496 = dma.done.wait [#allocation4], 768  }
  0x16   :  { %497 = vsyncadd [#allocation4], 4294966528  ;;  %vm33_vm0 = vcmask 130048   ;;  %v503_v0 = vmov 0.0|0.0   ;;  %v504_v1 = vmov 0.0   ;;  %vm505_vm1 = vmmov 0  }
  0x17   :  { %430 = vmatprep.subr.bf16.mxu0 %v503_v0  ;;  %433 = vmatprep.subr.bf16.mxu1 %v503_v0  ;;  %34 = vst.msk [vmem:[#allocation2] sm:$0xff] %vm33_vm0, %v504_v1  ;;  %v41_v2 = vld [vmem:[#allocation3 + $0x10] sm:$0xff]  ;;  %v42_v3 = vld [vmem:[#allocation3 + $0x18] sm:$0xff]  ;;  %v36_v4 = vld [vmem:[#allocation3] sm:$0xff]  ;;  %vm351_vm2 = vcmask 64512   ;;  %s506_s11 = smov [#allocation6]  }
  0x18   :  { %406 = vmatprep.mubr.msk.f32.mxu0 %vm505_vm1, %v504_v1  ;;  %413 = vmatprep.mubr.msk.f32.mxu1 %vm505_vm1, %v504_v1  ;;  %v431_v5 = vpack.c.bf16 %v42_v3, %v41_v2  ;;  %v37_v6 = vld [vmem:[#allocation3 + $0x8] sm:$0xff]  ;;  %v193_v8 = vld [vmem:[#allocation3 + $0x20] sm:$0xff]  ;;  %v35_v12 = vld [vmem:[%s583_s1] sm:$0xff]  ;;  %s375_s12 = sshll.u32 %s506_s11, 4  ;;  %v507_v39 = vmov 0   ;;  %s376_s12 = int_to_ptr.vmem [resolvable:$true] %s375_s12 }
  0x19   :  { %v434_v7 = vpack.c.bf16 %v37_v6, %v36_v4  ;;  %v194_v9 = vld [vmem:[#allocation3 + $0x28] sm:$0xff]  ;;  %v384_v10 = vld [vmem:[%s583_s1 + $0x8] sm:$0xff]  ;;  %v276_v14 = vld [vmem:[%s584_s2] sm:$0xff]  ;;  %s474_s13 = scalar_lea.vmem %s376_s12, 128  ;;  %p479_p11 = scmp.lt.s32.totalorder %s376_s12, %s376_s12 }
  0x1a   :  { %432 = vmatpush3.bf16.msra.mxu0 %v431_v5  ;;  %v437_v11 = vpack.c.bf16 %v194_v9, %v193_v8  ;;  %v387_v13 = vld [vmem:[%s583_s1 + $0x10] sm:$0xff]  ;;  %v277_v15 = vld [vmem:[%s584_s2 + $0x8] sm:$0xff]  ;;  %p475_p10 = scmp.ne.s32.totalorder %s376_s12, %s474_s13  ;;  %p480_p12 = scmp.lt.s32.totalorder %s474_s13, %s474_s13 }
  0x1b   :  { %435 = vmatpush3.bf16.msra.mxu1 %v434_v7  ;;  %436 = vmatprep.subr.bf16.mxu0 %v503_v0  ;;  %v440_v16 = vpack.c.bf16 %v277_v15, %v276_v14 }
  0x1c   :  { %439 = vmatprep.subr.bf16.mxu1 %v503_v0  ;;  %p481_p13 = por %p480_p12, %p479_p11 }
  0x1d   :  { %407 = vmatmul.mubr.msk.f32.vlgmr.msra.gmra.mrb[0].mxu0 %vm33_vm0, %v384_v10 }
  0x1e   :  { %414 = vmatmul.mubr.msk.f32.vlgmr.msra.gmra.mrb[0].mxu1 %vm33_vm0, %v35_v12  ;;  %438 = vmatpush3.bf16.msra.mxu0 %v437_v11  ;;  %v269_v23 = vld [vmem:[#allocation2] sm:$0xff]  ;;  %p482_p0 = pnand %p481_p13, %p475_p10 }
  0x1f   :  { %420 = vmatprep.mubr.msk.f32.mxu0 %vm505_vm1, %v504_v1  ;;  %427 = vmatprep.mubr.msk.f32.mxu1 %vm505_vm1, %v504_v1 }
  0x20   :  { %441 = vmatpush3.bf16.msra.mxu1 %v440_v16 }
  0x21   :  { %421 = vmatmul.mubr.msk.f32.vlgmr.msra.gmra.mrb[2].mxu0 %vm33_vm0, %v387_v13 }
  0xf0   :  { %v113_v17 = vpop.f32.mrb[0].mxu0 }
  0xf1   :  { %v408_v18 = vpop.f32.mrb[1].mxu0  ;;  %v186_v19 = vpop.f32.mrb[0].mxu1 }
  0xf2   :  { %v187_v20 = vadd.f32 %v186_v19, %v113_v17  ;;  %v415_v21 = vpop.f32.mrb[1].mxu1 }
  0xf4   :  { %v264_v22 = vpop.f32.mrb[2].mxu0 }
  0xf5   :  { %v268_v24 = vadd.f32 %v264_v22, %v187_v20  ;;  %v422_v25 = vpop.f32.mrb[3].mxu0 }
  0xf7   :  { %v270_v26 = vadd.f32 %v269_v23, %v268_v24 }
  0xf9   :  { %271 = vst.msk [vmem:[#allocation2] sm:$0xff] %vm33_vm0, %v270_v26 }
 0x100   :  { %v275_v27 = vld [vmem:[#allocation2] sm:$0xff] }
 0x101   :  { %428 = vmatmul.mubr.msk.f32.vlgmr.msra.gmra.mrb[2].mxu1 %vm33_vm0, %v275_v27 }
 0x1d4   :  { %v347_v28 = vpop.f32.mrb[2].mxu1 }
 0x1d5   :  { %v429_v29 = vpop.f32.mrb[3].mxu1  ;;  %v352_v30 = vsel %vm351_vm2, %v347_v28, 0.0 }
 0x1d6   :  { %353 = vadd.xlane.f32.xlu0 %v352_v30 }
 0x263   :  { %v354_v31 = vpop.xlane.xlu0 %353 }
 0x264   :  { %v355_v32 = vrot.slane %v354_v31, 4 }
 0x266   :  { %v356_v33 = vadd.f32 %v355_v32, %v354_v31 }
 0x268   :  { %v357_v34 = vrot.slane %v356_v33, 2 }
 0x26a   :  { %v358_v35 = vadd.f32 %v357_v34, %v356_v33 }
 0x26c   :  { %v359_v36 = vrot.slane %v358_v35, 1 }
 0x26e   :  { %v360_v37 = vadd.f32 %v359_v36, %v358_v35 }
 0x270   :  { %442 = vpush %v360_v37 }
 0x2a1   :  { %s443_s1 = spop %442 }
 0x2a2   :  { %s364_s2 = smul.f32 0.015625, %s443_s1 }
 0x2a4   :  { %v365_v38 = vstv %s364_s2 }
 0x2a5   :  { %vm366_vm3 = vcmp.gt.f32.partialorder %v347_v28, %v365_v38 }
 0x2a6   :  { %v367_v40 = vsel %vm366_vm3, 1, %v507_v39 }
 0x2a7   :  { %368 = vst.msk [vmem:[#allocation6] sm:$0xff] %vm351_vm2, %v367_v40 }
 0x2a8   :  { %485 = shalt.err (!%p482_p0)
}
 0x2a9   :  { %s486_s16 = scalar_lea.hbm %s585_s3, 128 }
 0x2aa   :  { %p487_p1 = scmp.ne.s32.totalorder %s585_s3, %s486_s16  ;;  %p490_p2 = scmp.lt.u32.totalorder %s486_s16, %s585_s3 }
 0x2ac   :  { %p492_p3 = pnand %p490_p2, %p487_p1 }
 0x2ae   :  { %495 = shalt.err (!%p492_p3)
}
 0x2af   :  { %378 = dma.vmem_to_hbm [thread:$0]  %s376_s12, 128, %s585_s3, [#allocation5]  }
 0x2b0   :  { %498 = dma.done.wait [#allocation5], 128  }
 0x2b1   :  { %499 = vsyncadd [#allocation5], 4294967168 }
 0x2b2   :  { %382 = vsyncpa [#allocation4], 1 }
 0x2b3   :  { %383 = vsyncpa [#allocation5], 1 }

</bundles_post_ra>
